<compile_context>
chip_gen: v7x
topology: tpu7x:2x2x1
jax: 0.10.0
libtpu: 0.0.40
codegen_flags: <defaults>
</compile_context>

<pallas_src>
import jax
import jax.numpy as jnp
from jax.experimental import pallas as pl
from jax.experimental.pallas import tpu as pltpu


# ----------------------------------------------------------------------------
# Faithful port of the module (no parameters, forward() -> None).
# ----------------------------------------------------------------------------
class FeatureEmbeddings:
    def __init__(self):
        # Reference __init__ defines no parameters.
        pass

    def forward(self):
        # Reference forward body is `pass` -> returns None.
        return None

    __call__ = forward


# ----------------------------------------------------------------------------
# Scaffolding Pallas kernel: elementwise identity copy.
# ----------------------------------------------------------------------------
def _copy_kernel(x_ref, o_ref):
    o_ref[...] = x_ref[...]


_VMEM_LIMIT_BYTES = 48 * 1024 * 1024  # explicit scoped-VMEM limit, safe on v5e/v6e/v7x
_LANE = 128
_SUBLANE = 8


def _lane_dense_2d_view(x):
    """Reshape x (contiguous) to a 2-D slab whose last dim is lane-dense."""
    total = x.size
    if total == 0:
        return x.reshape(1, max(total, 1))
    # Prefer a large multiple of 128 as the last dim (unmasked full-lane stores).
    for c in (1024, 512, 256, 128):
        if total % c == 0:
            return x.reshape(total // c, c)
    # Fallback: keep the original last dim (or 1 row for 1-D inputs).
    if x.ndim >= 2:
        return x.reshape(-1, x.shape[-1])
    return x.reshape(1, total)


def identity_pallas(x, *, force_copy=False, vmem_tile_budget_bytes=6 * 1024 * 1024):
    """Identity of x.

    Default path: return x unchanged (zero HBM traffic, no kernel).
    force_copy=True: materialize a fresh buffer via a pipelined Pallas copy
    that stays within a per-tile VMEM budget (row tiling, plus column tiling
    for very wide rows).
    """
    if not force_copy:
        # Optimal identity: no copy at all.
        return x

    orig_shape = x.shape
    x2d = _lane_dense_2d_view(x)
    rows, cols = x2d.shape
    itemsize = x2d.dtype.itemsize
    bytes_per_row = cols * itemsize
    budget = int(vmem_tile_budget_bytes)

    compiler_params = pltpu.CompilerParams(
        dimension_semantics=("parallel", "parallel"),
        vmem_limit_bytes=_VMEM_LIMIT_BYTES,
    )

    if rows * bytes_per_row <= budget:
        # Whole array fits one tile: single block, no grid, one DMA pair.
        out = pl.pallas_call(
            _copy_kernel,
            out_shape=jax.ShapeDtypeStruct((rows, cols), x2d.dtype),
            compiler_params=pltpu.CompilerParams(
                vmem_limit_bytes=_VMEM_LIMIT_BYTES
            ),
        )(x2d)
    elif _SUBLANE * bytes_per_row <= budget:
        # Row tiling only: largest sublane-aligned row tile within the budget.
        tile_rows = (budget // bytes_per_row) // _SUBLANE * _SUBLANE
        tile_rows = max(_SUBLANE, tile_rows)  # < rows is guaranteed here
        grid = (pl.cdiv(rows, tile_rows), 1)
        out = pl.pallas_call(
            _copy_kernel,
            out_shape=jax.ShapeDtypeStruct((rows, cols), x2d.dtype),
            grid=grid,
            in_specs=[pl.BlockSpec((tile_rows, cols), lambda i, j: (i, j))],
            out_specs=pl.BlockSpec((tile_rows, cols), lambda i, j: (i, j)),
            compiler_params=compiler_params,
        )(x2d)
    else:
        # Very wide rows: tile columns too (multiples of 128) so a single tile
        # never exceeds the budget.
        tile_cols = (budget // (_SUBLANE * itemsize)) // _LANE * _LANE
        tile_cols = max(_LANE, tile_cols)  # < cols is guaranteed here
        grid = (pl.cdiv(rows, _SUBLANE), pl.cdiv(cols, tile_cols))
        out = pl.pallas_call(
            _copy_kernel,
            out_shape=jax.ShapeDtypeStruct((rows, cols), x2d.dtype),
            grid=grid,
            in_specs=[pl.BlockSpec((_SUBLANE, tile_cols), lambda i, j: (i, j))],
            out_specs=pl.BlockSpec((_SUBLANE, tile_cols), lambda i, j: (i, j)),
            compiler_params=compiler_params,
        )(x2d)

    return out.reshape(orig_shape)


if __name__ == "__main__":
    # Faithful module call: no inputs, returns None (matches `forward(self): pass`).
    module = FeatureEmbeddings()
    assert module() is None

    key = jax.random.PRNGKey(0)
    k0, k1, k2, k3 = jax.random.split(key, 4)

    # Path 0: true identity -> input returned directly, no kernel, no HBM traffic.
    x0 = jax.random.normal(k0, (8, 32), dtype=jnp.float32)
    y0 = identity_pallas(x0)
    jax.block_until_ready(y0)
    assert y0 is x0

    # Path 1: forced copy, small input -> single whole-array block (no grid).
    x1 = jax.random.normal(k1, (16, 128), dtype=jnp.float32)
    y1 = identity_pallas(x1, force_copy=True)
    jax.block_until_ready(y1)
    assert y1.shape == x1.shape and y1.dtype == x1.dtype
    assert bool(jnp.array_equal(y1, x1))

    # Path 2: forced copy, tiny budget -> row-tiled grid with a ragged
    # (non-8-divisible) row count, exercising the masked last block.
    x2 = jax.random.normal(k2, (250, 384), dtype=jnp.float32)
    y2 = identity_pallas(x2, force_copy=True, vmem_tile_budget_bytes=64 * 1024)
    jax.block_until_ready(y2)
    assert y2.shape == x2.shape and y2.dtype == x2.dtype
    assert bool(jnp.array_equal(y2, x2))

    # Path 3: forced copy, very wide rows with a tiny budget -> 2-D (row, col)
    # tiled grid so per-tile VMEM stays within budget.
    x3 = jax.random.normal(k3, (2, 4, 16, 64), dtype=jnp.float32)
    y3 = identity_pallas(x3, force_copy=True, vmem_tile_budget_bytes=16 * 1024)
    jax.block_until_ready(y3)
    assert y3.shape == x3.shape and y3.dtype == x3.dtype
    assert bool(jnp.array_equal(y3, x3))

    print("KERNEL_OK")
</pallas_src>

<mosaic_0001>
module attributes {stable_mosaic.version = 11 : i64} {
  func.func @_copy_kernel(%arg0: memref<2x1024xf32, #tpu.memory_space<vmem>>, %arg1: memref<2x1024xf32, #tpu.memory_space<vmem>>) attributes {dimension_semantics = [], scalar_prefetch = 0 : i64, scratch_operands = 0 : i64, tpu.core_type = #tpu.core_type<tc>} {
    %c0 = arith.constant 0 : index
    %c0_0 = arith.constant 0 : index
    %0 = vector.load %arg0[%c0, %c0_0] : memref<2x1024xf32, #tpu.memory_space<vmem>>, vector<2x1024xf32>
    %c0_1 = arith.constant 0 : index
    %c0_2 = arith.constant 0 : index
    %1 = vector.load %arg1[%c0_1, %c0_2] : memref<2x1024xf32, #tpu.memory_space<vmem>>, vector<2x1024xf32>
    tpu.vector_store %arg1[%c0_1, %c0_2], %0 {strides = array<i32>} : memref<2x1024xf32, #tpu.memory_space<vmem>>, vector<2x1024xf32>,
    return
  }
}

</mosaic_0001>

<bundles_post_ra>
// kernel: tpu_custom_call.1
= control target key start
LH: loop header
LB: loop body
LE: loop exit
PB: predicated region body
PF: predicated region fallthrough
CT: control target
= control target key end

     0   :  { %6 = vsyncpa [#allocation3], 0  ;;  %s126_s0 = inlined_call_operand.hbm [shape: f32[2,1024], index: 0, kind: input, shape index: {}]   ;;  %s127_s1 = inlined_call_operand.hbm [shape: f32[2,1024], index: 1, kind: output, shape index: {}]  }
   0x1   :  { %7 = vsyncpa [#allocation4], 0  ;;  %s90_s6 = smov [#allocation2]   ;;  %s42_s10 = scalar_lea.hbm %s126_s0, 256 }
   0x2   :  { %s14_s7 = sshll.u32 %s90_s6, 4  ;;  %p43_p0 = scmp.ne.s32.totalorder %s126_s0, %s42_s10  ;;  %s15_s7 = int_to_ptr.vmem [resolvable:$true] %s14_s7 }
   0x3   :  { %p46_p1 = scmp.lt.u32.totalorder %s42_s10, %s126_s0 }
   0x5   :  { %p48_p2 = pnand %p46_p1, %p43_p0 }
   0x7   :  { %51 = shalt.err (!%p48_p2)
}
   0x8   :  { %s52_s15 = scalar_lea.vmem %s15_s7, 256  ;;  %p57_p4 = scmp.lt.s32.totalorder %s15_s7, %s15_s7 }
   0x9   :  { %p53_p3 = scmp.ne.s32.totalorder %s15_s7, %s52_s15  ;;  %p58_p5 = scmp.lt.s32.totalorder %s52_s15, %s52_s15 }
   0xb   :  { %p59_p6 = por %p58_p5, %p57_p4 }
   0xd   :  { %p60_p7 = pnand %p59_p6, %p53_p3 }
   0xf   :  { %63 = shalt.err (!%p60_p7)
}
  0x10   :  { %17 = dma.hbm_to_vmem [thread:$0]  %s126_s0, 256, %s15_s7, [#allocation3]  }
  0x11   :  { %86 = dma.done.wait [#allocation3], 256  }
  0x12   :  { %87 = vsyncadd [#allocation3], 4294967040  ;;  %s91_s18 = smov [#allocation5]   ;;  %v21_v0 = vld [vmem:[#allocation2] sm:$0xff]  ;;  %v22_v1 = vld [vmem:[#allocation2 + $0x8] sm:$0xff] }
  0x13   :  { %s31_s19 = sshll.u32 %s91_s18, 4  ;;  %23 = vst [vmem:[#allocation5] sm:$0xff] %v21_v0  ;;  %24 = vst [vmem:[#allocation5 + $0x8] sm:$0xff] %v22_v1  ;;  %s32_s19 = int_to_ptr.vmem [resolvable:$true] %s31_s19 }
  0x14   :  { %s64_s20 = scalar_lea.vmem %s32_s19, 256  ;;  %p69_p9 = scmp.lt.s32.totalorder %s32_s19, %s32_s19 }
  0x15   :  { %p65_p8 = scmp.ne.s32.totalorder %s32_s19, %s64_s20  ;;  %p70_p10 = scmp.lt.s32.totalorder %s64_s20, %s64_s20 }
  0x17   :  { %p71_p11 = por %p70_p10, %p69_p9 }
  0x19   :  { %p72_p12 = pnand %p71_p11, %p65_p8 }
  0x1b   :  { %75 = shalt.err (!%p72_p12)
}
  0x1c   :  { %s76_s0 = scalar_lea.hbm %s127_s1, 256 }
  0x1d   :  { %p77_p13 = scmp.ne.s32.totalorder %s127_s1, %s76_s0  ;;  %p80_p0 = scmp.lt.u32.totalorder %s76_s0, %s127_s1 }
  0x1f   :  { %p82_p1 = pnand %p80_p0, %p77_p13 }
  0x21   :  { %85 = shalt.err (!%p82_p1)
}
  0x22   :  { %34 = dma.vmem_to_hbm [thread:$0]  %s32_s19, 256, %s127_s1, [#allocation4]  }
  0x23   :  { %88 = dma.done.wait [#allocation4], 256  }
  0x24   :  { %89 = vsyncadd [#allocation4], 4294967040 }
  0x25   :  { %38 = vsyncpa [#allocation3], 1 }
  0x26   :  { %39 = vsyncpa [#allocation4], 1 }

</bundles_post_ra>
